<compile_context>
chip_gen: v7x
topology: tpu7x:2x2x1
jax: 0.10.0
libtpu: 0.0.40
codegen_flags: <defaults>
</compile_context>

<pallas_src>
import functools

import jax
import jax.numpy as jnp
from jax.experimental import pallas as pl
from jax.experimental.pallas import tpu as pltpu

_LANES = 128
_BOXES_PER_ROW = _LANES // 4  # 32 boxes per 128-lane row


def _deltas_from_interleaved(p_raw, g_raw):
    """Compute deltas on a (TR, 128) tile; each row = 32 boxes [x1 y1 x2 y2]*32.

    Returns an f32 tile with the same interleaved layout [dx dy dw dh]*32.
    """
    p = p_raw.astype(jnp.float32)
    g = g_raw.astype(jnp.float32)

    # Bring (x2, y2) of each box onto the lanes holding (x1, y1):
    #   out[k] = in[(k + 2) % 128]  ==  shift of 126.
    # Groups of 4 never straddle the 128-lane boundary, so wrapped lanes only
    # land on positions whose values are discarded by the select below.
    p2 = pltpu.roll(p, shift=_LANES - 2, axis=1)
    g2 = pltpu.roll(g, shift=_LANES - 2, axis=1)

    pc = (p + p2) * 0.5          # (px, py) on lanes {0,1} mod 4
    ps = p2 - p                  # (pw, ph)
    gc = (g + g2) * 0.5          # (gx, gy)
    gs = g2 - g                  # (gw, gh)

    # One exact EUP reciprocal instead of two divides (EUP is the binding
    # slot on v6e/v7x); the extra multiplies go to the mostly idle VALU.
    rp = pl.reciprocal(ps, approx=False)
    dxy = (gc - pc) * rp         # lanes {0,1} mod 4 -> (dx, dy)
    dwh = jnp.log(gs * rp)       # lanes {0,1} mod 4 -> (dw, dh)

    # Move (dw, dh) onto lanes {2, 3} mod 4:  out[k] = in[k - 2].
    dwh_sh = pltpu.roll(dwh, shift=2, axis=1)

    # Cheap (1, 128) lane mask broadcast over the tile (no full-tile iota).
    lane = jax.lax.broadcasted_iota(jnp.int32, (1, _LANES), 1)
    return jnp.where((lane & 3) < 2, dxy, dwh_sh)


def _kernel_plain(prop_ref, gt_ref, out_ref):
    d = _deltas_from_interleaved(prop_ref[...], gt_ref[...])
    out_ref[...] = d.astype(out_ref.dtype)


def _kernel_norm(means_ref, inv_std_ref, prop_ref, gt_ref, out_ref):
    d = _deltas_from_interleaved(prop_ref[...], gt_ref[...])
    out_ref[...] = ((d - means_ref[...]) * inv_std_ref[...]).astype(out_ref.dtype)


def _round_up(x, m):
    return ((x + m - 1) // m) * m


@functools.partial(jax.jit, static_argnames=("means", "stds", "tile_rows"))
def bbox2delta(
    proposals,
    gt,
    means=(0.0, 0.0, 0.0, 0.0),
    stds=(1.0, 1.0, 1.0, 1.0),
    *,
    tile_rows=2048,  # 2048 rows = 65,536 boxes = 1 MiB (f32) per operand/step
):
    """JAX/Pallas equivalent of the PyTorch bbox2delta.

    proposals, gt : (..., 4) boxes (x1, y1, x2, y2); f32/bf16/f16 kept native.
    Returns       : (..., 4) deltas (dx, dy, dw, dh), normalized, input dtype.
    Degenerate boxes (pw or ph == 0) produce inf/NaN, matching PyTorch.
    """
    assert proposals.shape == gt.shape
    assert proposals.shape[-1] == 4
    orig_shape = proposals.shape

    # Keep half-precision inputs at native width (halves input HBM traffic);
    # anything else is cast to f32 once.  Compute is f32 inside the kernel.
    in_dtype = proposals.dtype
    if not any(proposals.dtype == d for d in (jnp.bfloat16, jnp.float16, jnp.float32)):
        in_dtype = jnp.float32
    p = proposals.astype(in_dtype).reshape(-1, 4)
    g = gt.astype(in_dtype).reshape(-1, 4)
    n = p.shape[0]

    # Rows of 128 lanes (32 boxes each) in the flat, interleaved view.
    m = pl.cdiv(n, _BOXES_PER_ROW)
    pad = m * _BOXES_PER_ROW - n
    if pad:
        # Correctness fallback only (N % 32 != 0): pad with unit boxes
        # (0, 0, 1, 1) so the tail stays finite (no NaN/inf under debug_nans);
        # padded results are sliced off below.
        filler = jnp.tile(jnp.asarray([0.0, 0.0, 1.0, 1.0], in_dtype), (pad, 1))
        p = jnp.concatenate([p, filler], axis=0)
        g = jnp.concatenate([g, filler], axis=0)

    # Free row-major reshapes (no transpose, no extra HBM pass).
    p_flat = p.reshape(m, _LANES)
    g_flat = g.reshape(m, _LANES)

    # Tile rows: multiple of 16 (valid block for f32 and packed bf16/f16),
    # capped so large problems split into >= ~4 grid steps (both v7x cores
    # get work; shorter pipeline prologue/epilogue).  Ragged last block is
    # fine: OOB reads are garbage, OOB writes are masked.
    tr = _round_up(max(int(tile_rows), 16), 16)
    tr = min(tr, max(16, _round_up(pl.cdiv(m, 4), 16)))
    grid = (pl.cdiv(m, tr),)

    row_spec = pl.BlockSpec((tr, _LANES), lambda i: (i, 0))
    compiler_params = pltpu.CompilerParams(dimension_semantics=("parallel",))
    out_shape = jax.ShapeDtypeStruct((m, _LANES), in_dtype)

    is_default_norm = (tuple(float(x) for x in means) == (0.0,) * 4
                       and tuple(float(x) for x in stds) == (1.0,) * 4)

    if is_default_norm:
        # Default path: skip the normalization FMA and the two vector DMAs.
        out_flat = pl.pallas_call(
            _kernel_plain,
            out_shape=out_shape,
            grid=grid,
            in_specs=[row_spec, row_spec],
            out_specs=row_spec,
            compiler_params=compiler_params,
        )(p_flat, g_flat)
    else:
        vec_spec = pl.BlockSpec((1, _LANES), lambda i: (0, 0))
        means_t = jnp.tile(jnp.asarray(means, jnp.float32),
                           _BOXES_PER_ROW).reshape(1, _LANES)
        inv_std_t = jnp.tile(1.0 / jnp.asarray(stds, jnp.float32),
                             _BOXES_PER_ROW).reshape(1, _LANES)
        out_flat = pl.pallas_call(
            _kernel_norm,
            out_shape=out_shape,
            grid=grid,
            in_specs=[vec_spec, vec_spec, row_spec, row_spec],
            out_specs=row_spec,
            compiler_params=compiler_params,
        )(means_t, inv_std_t, p_flat, g_flat)

    out = out_flat.reshape(m * _BOXES_PER_ROW, 4)
    if pad:
        out = out[:n]
    return out.reshape(orig_shape)


class Bbox:
    """Mirror of the PyTorch Bbox module (stateless)."""

    def __call__(self, proposals, gt):
        return bbox2delta(proposals, gt)


def _bbox2delta_ref(proposals, gt, means=(0.0,) * 4, stds=(1.0,) * 4):
    """Pure-JAX reference for correctness checking."""
    proposals = proposals.astype(jnp.float32)
    gt = gt.astype(jnp.float32)
    px = (proposals[..., 0] + proposals[..., 2]) * 0.5
    py = (proposals[..., 1] + proposals[..., 3]) * 0.5
    pw = proposals[..., 2] - proposals[..., 0]
    ph = proposals[..., 3] - proposals[..., 1]
    gx = (gt[..., 0] + gt[..., 2]) * 0.5
    gy = (gt[..., 1] + gt[..., 3]) * 0.5
    gw = gt[..., 2] - gt[..., 0]
    gh = gt[..., 3] - gt[..., 1]
    dx = (gx - px) / pw
    dy = (gy - py) / ph
    dw = jnp.log(gw / pw)
    dh = jnp.log(gh / ph)
    deltas = jnp.stack([dx, dy, dw, dh], axis=-1)
    mm = jnp.asarray(means, jnp.float32)
    ss = jnp.asarray(stds, jnp.float32)
    return (deltas - mm) / ss


if __name__ == "__main__":
    key = jax.random.PRNGKey(0)
    k1, k2, k3, k4 = jax.random.split(key, 4)

    def make_boxes(kx, kw, n_boxes, dtype=jnp.float32):
        xy = jax.random.uniform(kx, (n_boxes, 2), minval=0.0, maxval=100.0)
        wh = jax.random.uniform(kw, (n_boxes, 2), minval=1.0, maxval=50.0)
        return jnp.concatenate([xy, xy + wh], axis=-1).astype(dtype)

    model = Bbox()

    # Case 1: N not a multiple of 32 (padded fallback path), default norm.
    n1 = 200
    p1 = make_boxes(k1, k2, n1)
    g1 = make_boxes(k3, k4, n1)
    out1 = model(p1, g1)
    jax.block_until_ready(out1)
    ref1 = _bbox2delta_ref(p1, g1)
    assert out1.shape == (n1, 4)
    assert jnp.allclose(out1, ref1, atol=1e-5, rtol=1e-5), "mismatch (N=200)"

    # Case 2: aligned N, small tile_rows -> multi-block grid, plus
    # non-default means/stds to exercise the normalization path.
    n2 = 1024
    p2 = make_boxes(k2, k3, n2)
    g2 = make_boxes(k4, k1, n2)
    means = (0.1, 0.2, 0.3, 0.4)
    stds = (0.5, 1.5, 2.0, 0.25)
    out2 = bbox2delta(p2, g2, means, stds, tile_rows=32)
    jax.block_until_ready(out2)
    ref2 = _bbox2delta_ref(p2, g2, means, stds)
    assert out2.shape == (n2, 4)
    assert jnp.allclose(out2, ref2, atol=1e-5, rtol=1e-5), "mismatch (N=1024)"

    # Case 3: bf16 inputs streamed at native width, default norm.
    n3 = 512
    p3 = make_boxes(k3, k1, n3, dtype=jnp.bfloat16)
    g3 = make_boxes(k2, k4, n3, dtype=jnp.bfloat16)
    out3 = model(p3, g3)
    jax.block_until_ready(out3)
    ref3 = _bbox2delta_ref(p3, g3)
    assert out3.shape == (n3, 4)
    assert out3.dtype == jnp.bfloat16
    assert jnp.allclose(out3.astype(jnp.float32), ref3, atol=2e-2, rtol=2e-2), \
        "mismatch (bf16)"

    print("KERNEL_OK")
</pallas_src>

<mosaic_0001>
module attributes {stable_mosaic.version = 11 : i64} {
  func.func @_kernel_plain(%arg0: i32, %arg1: memref<16x128xf32, #tpu.memory_space<vmem>>, %arg2: memref<16x128xf32, #tpu.memory_space<vmem>>, %arg3: memref<16x128xf32, #tpu.memory_space<vmem>>) attributes {dimension_semantics = [#tpu.dimension_semantics<parallel>], iteration_bounds = array<i64: 1>, scalar_prefetch = 0 : i64, scratch_operands = 0 : i64, tpu.core_type = #tpu.core_type<tc>, window_params = [{transform_indices = @transform_0, window_bounds = array<i64: 16, 128>}, {transform_indices = @transform_1, window_bounds = array<i64: 16, 128>}, {transform_indices = @transform_2, window_bounds = array<i64: 16, 128>}]} {
    %c0 = arith.constant 0 : index
    %c0_0 = arith.constant 0 : index
    %0 = vector.load %arg1[%c0, %c0_0] : memref<16x128xf32, #tpu.memory_space<vmem>>, vector<16x128xf32>
    %c0_1 = arith.constant 0 : index
    %c0_2 = arith.constant 0 : index
    %1 = vector.load %arg2[%c0_1, %c0_2] : memref<16x128xf32, #tpu.memory_space<vmem>>, vector<16x128xf32>
    %c126_i32 = arith.constant 126 : i32
    %2 = tpu.dynamic_rotate %0 by %c126_i32 dim 1 : vector<16x128xf32>, i32 -> vector<16x128xf32>
    %c126_i32_3 = arith.constant 126 : i32
    %3 = tpu.dynamic_rotate %1 by %c126_i32_3 dim 1 : vector<16x128xf32>, i32 -> vector<16x128xf32>
    %4 = arith.addf %0, %2 : vector<16x128xf32>
    %cst = arith.constant 5.000000e-01 : f32
    %5 = vector.broadcast %cst : f32 to vector<16x128xf32>
    %6 = arith.mulf %4, %5 : vector<16x128xf32>
    %7 = arith.subf %2, %0 : vector<16x128xf32>
    %8 = arith.addf %1, %3 : vector<16x128xf32>
    %cst_4 = arith.constant 5.000000e-01 : f32
    %9 = vector.broadcast %cst_4 : f32 to vector<16x128xf32>
    %10 = arith.mulf %8, %9 : vector<16x128xf32>
    %11 = arith.subf %3, %1 : vector<16x128xf32>
    %12 = tpu.reciprocal %7 : vector<16x128xf32> -> vector<16x128xf32>
    %13 = arith.subf %10, %6 : vector<16x128xf32>
    %14 = arith.mulf %13, %12 : vector<16x128xf32>
    %15 = arith.mulf %11, %12 : vector<16x128xf32>
    %16 = math.log %15 : vector<16x128xf32>
    %c2_i32 = arith.constant 2 : i32
    %17 = tpu.dynamic_rotate %16 by %c2_i32 dim 1 : vector<16x128xf32>, i32 -> vector<16x128xf32>
    %18 = tpu.iota {dimensions = array<i32: 1>} : vector<1x128xi32>
    %c3_i32 = arith.constant 3 : i32
    %19 = vector.broadcast %c3_i32 : i32 to vector<1x128xi32>
    %20 = arith.andi %18, %19 : vector<1x128xi32>
    %c2_i32_5 = arith.constant 2 : i32
    %21 = vector.broadcast %c2_i32_5 : i32 to vector<1x128xi32>
    %22 = arith.cmpi slt, %20, %21 : vector<1x128xi32>
    %23 = vector.shape_cast %22 : vector<1x128xi1> to vector<1x128xi1>
    %24 = vector.broadcast %23 : vector<1x128xi1> to vector<16x128xi1>
    %25 = arith.select %24, %14, %17 : vector<16x128xi1>, vector<16x128xf32>
    %c0_6 = arith.constant 0 : index
    %c0_7 = arith.constant 0 : index
    %26 = vector.load %arg3[%c0_6, %c0_7] : memref<16x128xf32, #tpu.memory_space<vmem>>, vector<16x128xf32>
    tpu.vector_store %arg3[%c0_6, %c0_7], %25 {strides = array<i32>} : memref<16x128xf32, #tpu.memory_space<vmem>>, vector<16x128xf32>,
    return
  }
  func.func @transform_0(%arg0: i32) -> (i32, i32) {
    %c0_i32 = arith.constant 0 : i32
    %c0_i32_0 = arith.constant 0 : i32
    return %arg0, %c0_i32 : i32, i32
  }
  func.func @transform_1(%arg0: i32) -> (i32, i32) {
    %c0_i32 = arith.constant 0 : i32
    %c0_i32_0 = arith.constant 0 : i32
    return %arg0, %c0_i32 : i32, i32
  }
  func.func @transform_2(%arg0: i32) -> (i32, i32) {
    %c0_i32 = arith.constant 0 : i32
    %c0_i32_0 = arith.constant 0 : i32
    return %arg0, %c0_i32 : i32, i32
  }
}

</mosaic_0001>

<bundles_post_ra>
// kernel: bbox2delta.1
= control target key start
LH: loop header
LB: loop body
LE: loop exit
PB: predicated region body
PF: predicated region fallthrough
CT: control target
= control target key end

     0   :  { %s107_s11 = smov 126   ;;  %v51_v16 = vlaneseq  ;;  %s133_s0 = inlined_call_operand.vmem [shape: f32[7,128], index: 0, kind: input, shape index: {}]   ;;  %s134_s1 = inlined_call_operand.vmem [shape: f32[7,128], index: 1, kind: input, shape index: {}]   ;;  %s135_s2 = inlined_call_operand.vmem [shape: f32[7,128], index: 2, kind: output, shape index: {}]  }
   0x1   :  { %v11_v0 = vld [vmem:[%s133_s0] sm:$0xff]  ;;  %s108_s0 = smov 2  }
   0x2   :  { %15 = vrot.lane.b32.xlu0 %v11_v0, %s107_s11  ;;  %v13_v1 = vld [vmem:[%s134_s1] sm:$0xff]  ;;  %v52_v17 = vand.u32 127, %v51_v16 }
   0x4   :  { %v53_v18 = vand.u32 3, %v52_v17 }
   0x6   :  { %19 = vrot.lane.b32.xlu0 %v13_v1, %s107_s11  ;;  %vm54_vm0 = vcmp.lt.s32.totalorder %v53_v18, 2 }
  0x74   :  { %v16_v2 = vpop.permute.xlu0 %15 }
  0x75   :  { %v27_v3 = vsub.f32 %v16_v2, %v11_v0  ;;  %v23_v4 = vadd.f32 %v16_v2, %v11_v0 }
  0x77   :  { %103 = vrcp.f32 %v27_v3  ;;  %v25_v7 = vmul.f32 0.5, %v23_v4 }
  0x78   :  { %v20_v5 = vpop.permute.xlu0 %19 }
  0x79   :  { %v29_v6 = vadd.f32 %v20_v5, %v13_v1  ;;  %v33_v10 = vsub.f32 %v20_v5, %v13_v1 }
  0x7b   :  { %v31_v8 = vmul.f32 0.5, %v29_v6 }
  0x7d   :  { %v37_v9 = vsub.f32 %v31_v8, %v25_v7 }
  0x81   :  { %v104_v11 = vpop.eup %103 }
  0x82   :  { %v39_v12 = vmul.f32 %v104_v11, %v37_v9  ;;  %v41_v13 = vmul.f32 %v104_v11, %v33_v10 }
  0x84   :  { %105 = vlog2.f32 %v41_v13 }
  0x8e   :  { %v106_v14 = vpop.eup %105 }
  0x8f   :  { %v44_v15 = vmul.f32 0.6931472, %v106_v14 }
  0x91   :  { %47 = vrot.lane.b32.xlu1 %v44_v15, %s108_s0 }
 0x103   :  { %v48_v19 = vpop.permute.xlu1 %47 }
 0x104   :  { %v57_v20 = vsel %vm54_vm0, %v39_v12, %v48_v19 }
 0x105   :  { %91 = vst [vmem:[%s135_s2] sm:$0xff] %v57_v20 }

</bundles_post_ra>
